<compile_context>
chip_gen: v7x
topology: tpu7x:2x2x1
jax: 0.10.0
libtpu: 0.0.40
codegen_flags: <defaults>
</compile_context>

<pallas_src>
import functools
import math

import jax
import jax.numpy as jnp
from jax.experimental import pallas as pl
from jax.experimental.pallas import tpu as pltpu

# ---- problem sizes (small, consistent with the module) ----
SEQ = 8          # L
BATCH = 2        # N
D_MODEL = 32     # E
N_HEAD = 4
HEAD_DIM = D_MODEL // N_HEAD
EPS = 1e-5       # nn.LayerNorm default eps


def _layernorm(h, w, b):
    # h: (L, E) f32 ; w, b: (1, E) f32
    mu = jnp.mean(h, axis=-1, keepdims=True)
    var = jnp.mean(jnp.square(h - mu), axis=-1, keepdims=True)
    return (h - mu) * jax.lax.rsqrt(var + EPS) * w + b


def block_kernel(x_ref,
                 ln1_w_ref, ln1_b_ref,
                 wqkv_ref, bqkv_ref,
                 wo_ref, bo_ref,
                 ln2_w_ref, ln2_b_ref,
                 w1_ref, b1_ref,
                 w2_ref, b2_ref,
                 o_ref, *, n_head):
    """One grid step == one batch element: x_ref is (L, E)."""
    x = x_ref[...].astype(jnp.float32)                                   # (L, E)
    L, E = x.shape
    dh = E // n_head

    # ---------------- attention branch ----------------
    h = _layernorm(x, ln1_w_ref[...], ln1_b_ref[...])                    # (L, E) f32

    # single lane-dense QKV matmul: (L, E) @ (E, 3E); scale already folded into Q
    qkv = jnp.dot(h.astype(jnp.bfloat16), wqkv_ref[...],
                  preferred_element_type=jnp.float32) + bqkv_ref[...]    # (L, 3E)

    # view q/k/v off the lane axis, then head-batch for the attention einsums
    q = qkv[:, :E].reshape(L, n_head, dh).transpose(1, 0, 2)             # (H, L, dh)
    k = qkv[:, E:2 * E].reshape(L, n_head, dh).transpose(1, 0, 2)
    v = qkv[:, 2 * E:].reshape(L, n_head, dh).transpose(1, 0, 2)

    # per-batch scores only (no cross-batch work, no mask needed)
    s = jnp.einsum("hld,hmd->hlm",
                   q.astype(jnp.bfloat16), k.astype(jnp.bfloat16),
                   preferred_element_type=jnp.float32)                   # (H, L, L)
    s = s - jnp.max(s, axis=-1, keepdims=True)
    p = jnp.exp(s)
    p = p * pl.reciprocal(jnp.sum(p, axis=-1, keepdims=True), approx=True)
    # TODO(synk): an external attn_mask (module arg, None here) would be added to
    # `s` as a bias before the softmax; a fully-masked row would then need a guard
    # around the approx reciprocal.

    ctx = jnp.einsum("hlm,hmd->hld", p.astype(jnp.bfloat16), v.astype(jnp.bfloat16),
                     preferred_element_type=jnp.float32)                 # (H, L, dh)
    # lane-pack the heads back to (L, E) and do ONE out-projection matmul
    ctx_packed = ctx.transpose(1, 0, 2).reshape(L, E)                    # (L, E)
    attn_out = jnp.dot(ctx_packed.astype(jnp.bfloat16), wo_ref[...],
                       preferred_element_type=jnp.float32) + bo_ref[...]
    x = x + attn_out
    # TODO(synk): attention dropout is a no-op in eval mode and is not implemented.

    # ---------------- MLP branch ----------------
    h2 = _layernorm(x, ln2_w_ref[...], ln2_b_ref[...])
    ff = jnp.dot(h2.astype(jnp.bfloat16), w1_ref[...],
                 preferred_element_type=jnp.float32) + b1_ref[...]       # (L, 4E)
    ff = ff * pl.reciprocal(1.0 + jnp.exp(-1.702 * ff), approx=True)     # QuickGELU
    ff = jnp.dot(ff.astype(jnp.bfloat16), w2_ref[...],
                 preferred_element_type=jnp.float32) + b2_ref[...]       # (L, E)
    x = x + ff

    o_ref[...] = x.astype(o_ref.dtype)


def pack_params(raw, n_head=N_HEAD):
    """PyTorch-layout params -> kernel-friendly layout (lane-packed bf16 matmul weights)."""
    E = raw["wo"].shape[0]
    dh = E // n_head
    scale = 1.0 / math.sqrt(dh)

    # fold 1/sqrt(dh) into the Q rows of in_proj_weight / in_proj_bias
    wq = raw["wqkv"][:E] * scale
    wkv = raw["wqkv"][E:]
    bq = raw["bqkv"][:E] * scale
    bkv = raw["bqkv"][E:]

    return {
        "ln1_w": raw["ln1_w"].reshape(1, E).astype(jnp.float32),
        "ln1_b": raw["ln1_b"].reshape(1, E).astype(jnp.float32),
        # (E, 3E): columns are [q | k | v] output features, head-contiguous
        "wqkv": jnp.concatenate([wq, wkv], axis=0).T.astype(jnp.bfloat16),
        "bqkv": jnp.concatenate([bq, bkv]).reshape(1, 3 * E).astype(jnp.float32),
        "wo": raw["wo"].T.astype(jnp.bfloat16),                          # (E, E)
        "bo": raw["bo"].reshape(1, E).astype(jnp.float32),
        "ln2_w": raw["ln2_w"].reshape(1, E).astype(jnp.float32),
        "ln2_b": raw["ln2_b"].reshape(1, E).astype(jnp.float32),
        "w1": raw["w1"].T.astype(jnp.bfloat16),                          # (E, 4E)
        "b1": raw["b1"].reshape(1, 4 * E).astype(jnp.float32),
        "w2": raw["w2"].T.astype(jnp.bfloat16),                          # (4E, E)
        "b2": raw["b2"].reshape(1, E).astype(jnp.float32),
    }


def residual_attention_block(x_lne, params, *, n_head=N_HEAD):
    """x_lne: (L, N, E), PyTorch nn.MultiheadAttention layout."""
    L, N, E = x_lne.shape
    # One tiny XLA transpose to batch-major so the grid axis is the leading dim and
    # the per-step block (L, E) exactly matches the trailing dims (keeps the
    # (8,128)/full-dim BlockSpec rule trivially satisfied).
    # TODO(synk): at production sizes, present x batch-major upstream (or relayout
    # via the index_map) to avoid this extra activation round trip.
    x_nle = jnp.transpose(x_lne, (1, 0, 2))                              # (N, L, E)

    def wspec(shape):
        return pl.BlockSpec(shape, lambda n: (0,) * len(shape))          # VMEM-resident

    p = params
    out_nle = pl.pallas_call(
        functools.partial(block_kernel, n_head=n_head),
        out_shape=jax.ShapeDtypeStruct((N, L, E), x_lne.dtype),
        grid=(N,),
        in_specs=[
            pl.BlockSpec((None, L, E), lambda n: (n, 0, 0)),             # x, per batch
            wspec(p["ln1_w"].shape), wspec(p["ln1_b"].shape),
            wspec(p["wqkv"].shape), wspec(p["bqkv"].shape),
            wspec(p["wo"].shape), wspec(p["bo"].shape),
            wspec(p["ln2_w"].shape), wspec(p["ln2_b"].shape),
            wspec(p["w1"].shape), wspec(p["b1"].shape),
            wspec(p["w2"].shape), wspec(p["b2"].shape),
        ],
        out_specs=pl.BlockSpec((None, L, E), lambda n: (n, 0, 0)),
        compiler_params=pltpu.CompilerParams(
            dimension_semantics=("parallel",)),                          # v7x: 2 TCs
    )(x_nle,
      p["ln1_w"], p["ln1_b"], p["wqkv"], p["bqkv"], p["wo"], p["bo"],
      p["ln2_w"], p["ln2_b"], p["w1"], p["b1"], p["w2"], p["b2"])

    return jnp.transpose(out_nle, (1, 0, 2))                             # (L, N, E)


# ---------------- pure-JAX reference (for correctness check) ----------------
def reference(x_lne, raw):
    ln1_w, ln1_b = raw["ln1_w"], raw["ln1_b"]
    ln2_w, ln2_b = raw["ln2_w"], raw["ln2_b"]
    wqkv, bqkv = raw["wqkv"], raw["bqkv"]
    wo, bo = raw["wo"], raw["bo"]
    w1, b1 = raw["w1"], raw["b1"]
    w2, b2 = raw["w2"], raw["b2"]

    def ln(h, w, b):
        mu = h.mean(-1, keepdims=True)
        var = ((h - mu) ** 2).mean(-1, keepdims=True)
        return (h - mu) / jnp.sqrt(var + EPS) * w + b

    L, N, E = x_lne.shape
    x = x_lne
    h = ln(x, ln1_w, ln1_b)
    qkv = h @ wqkv.T + bqkv                                              # (L, N, 3E)
    scale = 1.0 / math.sqrt(HEAD_DIM)
    q = (qkv[..., :E] * scale).reshape(L, N, N_HEAD, HEAD_DIM)
    k = qkv[..., E:2 * E].reshape(L, N, N_HEAD, HEAD_DIM)
    v = qkv[..., 2 * E:].reshape(L, N, N_HEAD, HEAD_DIM)
    s = jnp.einsum("lnhd,mnhd->nhlm", q, k)
    p = jax.nn.softmax(s, axis=-1)
    o = jnp.einsum("nhlm,mnhd->lnhd", p, v).reshape(L, N, E)
    x = x + (o @ wo.T + bo)
    h2 = ln(x, ln2_w, ln2_b)
    ff = h2 @ w1.T + b1
    ff = ff * jax.nn.sigmoid(1.702 * ff)
    x = x + (ff @ w2.T + b2)
    return x


if __name__ == "__main__":
    E = D_MODEL
    key = jax.random.PRNGKey(0)
    keys = jax.random.split(key, 16)

    def nrm(k, shape, scale=0.05):
        return scale * jax.random.normal(k, shape, jnp.float32)

    # "raw" parameters in PyTorch layout
    raw = {
        "ln1_w": 1.0 + nrm(keys[0], (E,)),
        "ln1_b": nrm(keys[1], (E,)),
        "wqkv":  nrm(keys[2], (3 * E, E)),    # nn.MultiheadAttention.in_proj_weight
        "bqkv":  nrm(keys[3], (3 * E,)),
        "wo":    nrm(keys[4], (E, E)),        # out_proj.weight
        "bo":    nrm(keys[5], (E,)),
        "ln2_w": 1.0 + nrm(keys[6], (E,)),
        "ln2_b": nrm(keys[7], (E,)),
        "w1":    nrm(keys[8], (4 * E, E)),    # mlp.c_fc.weight
        "b1":    nrm(keys[9], (4 * E,)),
        "w2":    nrm(keys[10], (E, 4 * E)),   # mlp.c_proj.weight
        "b2":    nrm(keys[11], (E,)),
    }
    params = pack_params(raw)

    # input in (L, N, E) like the PyTorch module expects
    x = jax.random.normal(keys[12], (SEQ, BATCH, D_MODEL), jnp.float32)

    out = jax.block_until_ready(residual_attention_block(x, params))
    ref = reference(x, raw)

    assert out.shape == x.shape and out.dtype == x.dtype
    max_err = float(jnp.max(jnp.abs(out - ref)))
    # bf16 MXU operands + approx reciprocals -> loosened tolerance vs the f32 reference
    assert jnp.allclose(out, ref, rtol=2e-2, atol=2e-2), (
        f"mismatch vs JAX reference (max abs err {max_err})")

    print("KERNEL_OK")
</pallas_src>

<mosaic_0001>
module attributes {stable_mosaic.version = 11 : i64} {
  func.func @block_kernel(%arg0: i32, %arg1: memref<1x8x32xf32, #tpu.memory_space<vmem>>, %arg2: memref<1x32xf32, #tpu.memory_space<vmem>>, %arg3: memref<1x32xf32, #tpu.memory_space<vmem>>, %arg4: memref<32x96xbf16, #tpu.memory_space<vmem>>, %arg5: memref<1x96xf32, #tpu.memory_space<vmem>>, %arg6: memref<32x32xbf16, #tpu.memory_space<vmem>>, %arg7: memref<1x32xf32, #tpu.memory_space<vmem>>, %arg8: memref<1x32xf32, #tpu.memory_space<vmem>>, %arg9: memref<1x32xf32, #tpu.memory_space<vmem>>, %arg10: memref<32x128xbf16, #tpu.memory_space<vmem>>, %arg11: memref<1x128xf32, #tpu.memory_space<vmem>>, %arg12: memref<128x32xbf16, #tpu.memory_space<vmem>>, %arg13: memref<1x32xf32, #tpu.memory_space<vmem>>, %arg14: memref<1x8x32xf32, #tpu.memory_space<vmem>>) attributes {dimension_semantics = [#tpu.dimension_semantics<parallel>], iteration_bounds = array<i64: 2>, scalar_prefetch = 0 : i64, scratch_operands = 0 : i64, tpu.core_type = #tpu.core_type<tc>, window_params = [{transform_indices = @transform_0, window_bounds = array<i64: 1, 8, 32>}, {pipeline_mode = #tpu.pipeline_mode<synchronous>, transform_indices = @transform_1, window_bounds = array<i64: 1, 32>}, {pipeline_mode = #tpu.pipeline_mode<synchronous>, transform_indices = @transform_2, window_bounds = array<i64: 1, 32>}, {pipeline_mode = #tpu.pipeline_mode<synchronous>, transform_indices = @transform_3, window_bounds = array<i64: 32, 96>}, {pipeline_mode = #tpu.pipeline_mode<synchronous>, transform_indices = @transform_4, window_bounds = array<i64: 1, 96>}, {pipeline_mode = #tpu.pipeline_mode<synchronous>, transform_indices = @transform_5, window_bounds = array<i64: 32, 32>}, {pipeline_mode = #tpu.pipeline_mode<synchronous>, transform_indices = @transform_6, window_bounds = array<i64: 1, 32>}, {pipeline_mode = #tpu.pipeline_mode<synchronous>, transform_indices = @transform_7, window_bounds = array<i64: 1, 32>}, {pipeline_mode = #tpu.pipeline_mode<synchronous>, transform_indices = @transform_8, window_bounds = array<i64: 1, 32>}, {pipeline_mode = #tpu.pipeline_mode<synchronous>, transform_indices = @transform_9, window_bounds = array<i64: 32, 128>}, {pipeline_mode = #tpu.pipeline_mode<synchronous>, transform_indices = @transform_10, window_bounds = array<i64: 1, 128>}, {pipeline_mode = #tpu.pipeline_mode<synchronous>, transform_indices = @transform_11, window_bounds = array<i64: 128, 32>}, {pipeline_mode = #tpu.pipeline_mode<synchronous>, transform_indices = @transform_12, window_bounds = array<i64: 1, 32>}, {transform_indices = @transform_13, window_bounds = array<i64: 1, 8, 32>}]} {
    %c0 = arith.constant 0 : index
    %c0_0 = arith.constant 0 : index
    %c0_1 = arith.constant 0 : index
    %0 = vector.load %arg1[%c0, %c0_0, %c0_1] : memref<1x8x32xf32, #tpu.memory_space<vmem>>, vector<1x8x32xf32>
    %1 = vector.shape_cast %0 : vector<1x8x32xf32> to vector<8x32xf32>
    %c0_2 = arith.constant 0 : index
    %c0_3 = arith.constant 0 : index
    %2 = vector.load %arg2[%c0_2, %c0_3] : memref<1x32xf32, #tpu.memory_space<vmem>>, vector<1x32xf32>
    %c0_4 = arith.constant 0 : index
    %c0_5 = arith.constant 0 : index
    %3 = vector.load %arg3[%c0_4, %c0_5] : memref<1x32xf32, #tpu.memory_space<vmem>>, vector<1x32xf32>
    %cst = arith.constant dense<0.000000e+00> : vector<8xf32>
    %4 = vector.multi_reduction <add>, %1, %cst [1] : vector<8x32xf32> to vector<8xf32>
    %5 = vector.shape_cast %4 : vector<8xf32> to vector<8x1xf32>
    %cst_6 = arith.constant 3.200000e+01 : f32
    %6 = vector.broadcast %cst_6 : f32 to vector<8x1xf32>
    %7 = arith.divf %5, %6 : vector<8x1xf32>
    %8 = vector.broadcast %7 : vector<8x1xf32> to vector<8x32xf32>
    %9 = arith.subf %1, %8 : vector<8x32xf32>
    %10 = arith.mulf %9, %9 : vector<8x32xf32>
    %cst_7 = arith.constant dense<0.000000e+00> : vector<8xf32>
    %11 = vector.multi_reduction <add>, %10, %cst_7 [1] : vector<8x32xf32> to vector<8xf32>
    %12 = vector.shape_cast %11 : vector<8xf32> to vector<8x1xf32>
    %cst_8 = arith.constant 3.200000e+01 : f32
    %13 = vector.broadcast %cst_8 : f32 to vector<8x1xf32>
    %14 = arith.divf %12, %13 : vector<8x1xf32>
    %15 = vector.broadcast %7 : vector<8x1xf32> to vector<8x32xf32>
    %16 = arith.subf %1, %15 : vector<8x32xf32>
    %cst_9 = arith.constant 9.99999974E-6 : f32
    %17 = vector.broadcast %cst_9 : f32 to vector<8x1xf32>
    %18 = arith.addf %14, %17 : vector<8x1xf32>
    %19 = math.rsqrt %18 : vector<8x1xf32>
    %20 = vector.broadcast %19 : vector<8x1xf32> to vector<8x32xf32>
    %21 = arith.mulf %16, %20 : vector<8x32xf32>
    %22 = vector.broadcast %2 : vector<1x32xf32> to vector<8x32xf32>
    %23 = arith.mulf %21, %22 : vector<8x32xf32>
    %24 = vector.broadcast %3 : vector<1x32xf32> to vector<8x32xf32>
    %25 = arith.addf %23, %24 : vector<8x32xf32>
    %26 = arith.truncf %25 : vector<8x32xf32> to vector<8x32xbf16>
    %c0_10 = arith.constant 0 : index
    %c0_11 = arith.constant 0 : index
    %27 = vector.load %arg4[%c0_10, %c0_11] : memref<32x96xbf16, #tpu.memory_space<vmem>>, vector<32x96xbf16>
    %cst_12 = arith.constant dense<0.000000e+00> : vector<8x96xf32>
    %28 = tpu.matmul %26, %27, %cst_12 {dimension_numbers = #tpu.dot_dimension_numbers<[1], [0], [0], [1], [0, 0, 1, 1], [], []>} : vector<8x32xbf16>, vector<32x96xbf16>, vector<8x96xf32> -> vector<8x96xf32>
    %c0_13 = arith.constant 0 : index
    %c0_14 = arith.constant 0 : index
    %29 = vector.load %arg5[%c0_13, %c0_14] : memref<1x96xf32, #tpu.memory_space<vmem>>, vector<1x96xf32>
    %30 = vector.broadcast %29 : vector<1x96xf32> to vector<8x96xf32>
    %31 = arith.addf %28, %30 : vector<8x96xf32>
    %32 = vector.extract_strided_slice %31 {offsets = [0, 0], sizes = [8, 32], strides = [1, 1]} : vector<8x96xf32> to vector<8x32xf32>
    %33 = vector.shape_cast %32 : vector<8x32xf32> to vector<8x4x8xf32>
    %34 = tpu.transpose %33, [1, 0, 2] : vector<8x4x8xf32> -> vector<4x8x8xf32>
    %35 = vector.extract_strided_slice %31 {offsets = [0, 32], sizes = [8, 32], strides = [1, 1]} : vector<8x96xf32> to vector<8x32xf32>
    %36 = vector.shape_cast %35 : vector<8x32xf32> to vector<8x4x8xf32>
    %37 = tpu.transpose %36, [1, 0, 2] : vector<8x4x8xf32> -> vector<4x8x8xf32>
    %38 = vector.extract_strided_slice %31 {offsets = [0, 64], sizes = [8, 32], strides = [1, 1]} : vector<8x96xf32> to vector<8x32xf32>
    %39 = vector.shape_cast %38 : vector<8x32xf32> to vector<8x4x8xf32>
    %40 = tpu.transpose %39, [1, 0, 2] : vector<8x4x8xf32> -> vector<4x8x8xf32>
    %41 = arith.truncf %34 : vector<4x8x8xf32> to vector<4x8x8xbf16>
    %42 = arith.truncf %37 : vector<4x8x8xf32> to vector<4x8x8xbf16>
    "tpu.trace_start"() <{level = 10 : i32, message = "hld,hmd->hlm"}> : () -> ()
    %cst_15 = arith.constant dense<0.000000e+00> : vector<4x8x8xf32>
    %43 = tpu.matmul %41, %42, %cst_15 {dimension_numbers = #tpu.dot_dimension_numbers<[2], [2], [1], [1], [0, 0, 0, 1, 1, 1], [0], [0]>} : vector<4x8x8xbf16>, vector<4x8x8xbf16>, vector<4x8x8xf32> -> vector<4x8x8xf32>
    "tpu.trace_stop"() : () -> ()
    %cst_16 = arith.constant dense<0xFF800000> : vector<4x8xf32>
    %44 = vector.multi_reduction <maximumf>, %43, %cst_16 [2] : vector<4x8x8xf32> to vector<4x8xf32>
    %45 = vector.shape_cast %44 : vector<4x8xf32> to vector<4x8x1xf32>
    %46 = vector.broadcast %45 : vector<4x8x1xf32> to vector<4x8x8xf32>
    %47 = arith.subf %43, %46 : vector<4x8x8xf32>
    %48 = math.exp %47 : vector<4x8x8xf32>
    %cst_17 = arith.constant dense<0.000000e+00> : vector<4x8xf32>
    %49 = vector.multi_reduction <add>, %48, %cst_17 [2] : vector<4x8x8xf32> to vector<4x8xf32>
    %50 = vector.shape_cast %49 : vector<4x8xf32> to vector<4x8x1xf32>
    %51 = tpu.reciprocal %50 {approx = true} : vector<4x8x1xf32> -> vector<4x8x1xf32>
    %52 = vector.broadcast %51 : vector<4x8x1xf32> to vector<4x8x8xf32>
    %53 = arith.mulf %48, %52 : vector<4x8x8xf32>
    %54 = arith.truncf %53 : vector<4x8x8xf32> to vector<4x8x8xbf16>
    %55 = arith.truncf %40 : vector<4x8x8xf32> to vector<4x8x8xbf16>
    "tpu.trace_start"() <{level = 10 : i32, message = "hlm,hmd->hld"}> : () -> ()
    %cst_18 = arith.constant dense<0.000000e+00> : vector<4x8x8xf32>
    %56 = tpu.matmul %54, %55, %cst_18 {dimension_numbers = #tpu.dot_dimension_numbers<[2], [1], [1], [2], [0, 0, 0, 1, 1, 2], [0], [0]>} : vector<4x8x8xbf16>, vector<4x8x8xbf16>, vector<4x8x8xf32> -> vector<4x8x8xf32>
    "tpu.trace_stop"() : () -> ()
    %57 = tpu.transpose %56, [1, 0, 2] : vector<4x8x8xf32> -> vector<8x4x8xf32>
    %58 = vector.shape_cast %57 : vector<8x4x8xf32> to vector<8x32xf32>
    %59 = arith.truncf %58 : vector<8x32xf32> to vector<8x32xbf16>
    %c0_19 = arith.constant 0 : index
    %c0_20 = arith.constant 0 : index
    %60 = vector.load %arg6[%c0_19, %c0_20] : memref<32x32xbf16, #tpu.memory_space<vmem>>, vector<32x32xbf16>
    %cst_21 = arith.constant dense<0.000000e+00> : vector<8x32xf32>
    %61 = tpu.matmul %59, %60, %cst_21 {dimension_numbers = #tpu.dot_dimension_numbers<[1], [0], [0], [1], [0, 0, 1, 1], [], []>} : vector<8x32xbf16>, vector<32x32xbf16>, vector<8x32xf32> -> vector<8x32xf32>
    %c0_22 = arith.constant 0 : index
    %c0_23 = arith.constant 0 : index
    %62 = vector.load %arg7[%c0_22, %c0_23] : memref<1x32xf32, #tpu.memory_space<vmem>>, vector<1x32xf32>
    %63 = vector.broadcast %62 : vector<1x32xf32> to vector<8x32xf32>
    %64 = arith.addf %61, %63 : vector<8x32xf32>
    %65 = arith.addf %1, %64 : vector<8x32xf32>
    %c0_24 = arith.constant 0 : index
    %c0_25 = arith.constant 0 : index
    %66 = vector.load %arg8[%c0_24, %c0_25] : memref<1x32xf32, #tpu.memory_space<vmem>>, vector<1x32xf32>
    %c0_26 = arith.constant 0 : index
    %c0_27 = arith.constant 0 : index
    %67 = vector.load %arg9[%c0_26, %c0_27] : memref<1x32xf32, #tpu.memory_space<vmem>>, vector<1x32xf32>
    %cst_28 = arith.constant dense<0.000000e+00> : vector<8xf32>
    %68 = vector.multi_reduction <add>, %65, %cst_28 [1] : vector<8x32xf32> to vector<8xf32>
    %69 = vector.shape_cast %68 : vector<8xf32> to vector<8x1xf32>
    %cst_29 = arith.constant 3.200000e+01 : f32
    %70 = vector.broadcast %cst_29 : f32 to vector<8x1xf32>
    %71 = arith.divf %69, %70 : vector<8x1xf32>
    %72 = vector.broadcast %71 : vector<8x1xf32> to vector<8x32xf32>
    %73 = arith.subf %65, %72 : vector<8x32xf32>
    %74 = arith.mulf %73, %73 : vector<8x32xf32>
    %cst_30 = arith.constant dense<0.000000e+00> : vector<8xf32>
    %75 = vector.multi_reduction <add>, %74, %cst_30 [1] : vector<8x32xf32> to vector<8xf32>
    %76 = vector.shape_cast %75 : vector<8xf32> to vector<8x1xf32>
    %cst_31 = arith.constant 3.200000e+01 : f32
    %77 = vector.broadcast %cst_31 : f32 to vector<8x1xf32>
    %78 = arith.divf %76, %77 : vector<8x1xf32>
    %79 = vector.broadcast %71 : vector<8x1xf32> to vector<8x32xf32>
    %80 = arith.subf %65, %79 : vector<8x32xf32>
    %cst_32 = arith.constant 9.99999974E-6 : f32
    %81 = vector.broadcast %cst_32 : f32 to vector<8x1xf32>
    %82 = arith.addf %78, %81 : vector<8x1xf32>
    %83 = math.rsqrt %82 : vector<8x1xf32>
    %84 = vector.broadcast %83 : vector<8x1xf32> to vector<8x32xf32>
    %85 = arith.mulf %80, %84 : vector<8x32xf32>
    %86 = vector.broadcast %66 : vector<1x32xf32> to vector<8x32xf32>
    %87 = arith.mulf %85, %86 : vector<8x32xf32>
    %88 = vector.broadcast %67 : vector<1x32xf32> to vector<8x32xf32>
    %89 = arith.addf %87, %88 : vector<8x32xf32>
    %90 = arith.truncf %89 : vector<8x32xf32> to vector<8x32xbf16>
    %c0_33 = arith.constant 0 : index
    %c0_34 = arith.constant 0 : index
    %91 = vector.load %arg10[%c0_33, %c0_34] : memref<32x128xbf16, #tpu.memory_space<vmem>>, vector<32x128xbf16>
    %cst_35 = arith.constant dense<0.000000e+00> : vector<8x128xf32>
    %92 = tpu.matmul %90, %91, %cst_35 {dimension_numbers = #tpu.dot_dimension_numbers<[1], [0], [0], [1], [0, 0, 1, 1], [], []>} : vector<8x32xbf16>, vector<32x128xbf16>, vector<8x128xf32> -> vector<8x128xf32>
    %c0_36 = arith.constant 0 : index
    %c0_37 = arith.constant 0 : index
    %93 = vector.load %arg11[%c0_36, %c0_37] : memref<1x128xf32, #tpu.memory_space<vmem>>, vector<1x128xf32>
    %94 = vector.broadcast %93 : vector<1x128xf32> to vector<8x128xf32>
    %95 = arith.addf %92, %94 : vector<8x128xf32>
    %cst_38 = arith.constant -1.702000e+00 : f32
    %96 = vector.broadcast %cst_38 : f32 to vector<8x128xf32>
    %97 = arith.mulf %96, %95 : vector<8x128xf32>
    %98 = math.exp %97 : vector<8x128xf32>
    %cst_39 = arith.constant 1.000000e+00 : f32
    %99 = vector.broadcast %cst_39 : f32 to vector<8x128xf32>
    %100 = arith.addf %99, %98 : vector<8x128xf32>
    %101 = tpu.reciprocal %100 {approx = true} : vector<8x128xf32> -> vector<8x128xf32>
    %102 = arith.mulf %95, %101 : vector<8x128xf32>
    %103 = arith.truncf %102 : vector<8x128xf32> to vector<8x128xbf16>
    %c0_40 = arith.constant 0 : index
    %c0_41 = arith.constant 0 : index
    %104 = vector.load %arg12[%c0_40, %c0_41] : memref<128x32xbf16, #tpu.memory_space<vmem>>, vector<128x32xbf16>
    %cst_42 = arith.constant dense<0.000000e+00> : vector<8x32xf32>
    %105 = tpu.matmul %103, %104, %cst_42 {dimension_numbers = #tpu.dot_dimension_numbers<[1], [0], [0], [1], [0, 0, 1, 1], [], []>} : vector<8x128xbf16>, vector<128x32xbf16>, vector<8x32xf32> -> vector<8x32xf32>
    %c0_43 = arith.constant 0 : index
    %c0_44 = arith.constant 0 : index
    %106 = vector.load %arg13[%c0_43, %c0_44] : memref<1x32xf32, #tpu.memory_space<vmem>>, vector<1x32xf32>
    %107 = vector.broadcast %106 : vector<1x32xf32> to vector<8x32xf32>
    %108 = arith.addf %105, %107 : vector<8x32xf32>
    %109 = arith.addf %65, %108 : vector<8x32xf32>
    %c0_45 = arith.constant 0 : index
    %c0_46 = arith.constant 0 : index
    %c0_47 = arith.constant 0 : index
    %110 = vector.load %arg14[%c0_45, %c0_46, %c0_47] : memref<1x8x32xf32, #tpu.memory_space<vmem>>, vector<1x8x32xf32>
    %111 = vector.shape_cast %110 : vector<1x8x32xf32> to vector<8x32xf32>
    %112 = vector.shape_cast %109 : vector<8x32xf32> to vector<1x8x32xf32>
    tpu.vector_store %arg14[%c0_45, %c0_46, %c0_47], %112 {strides = array<i32>} : memref<1x8x32xf32, #tpu.memory_space<vmem>>, vector<1x8x32xf32>,
    return
  }
  func.func @transform_0(%arg0: i32) -> (i32, i32, i32) {
    %c0_i32 = arith.constant 0 : i32
    %c0_i32_0 = arith.constant 0 : i32
    %c0_i32_1 = arith.constant 0 : i32
    return %arg0, %c0_i32, %c0_i32_0 : i32, i32, i32
  }
  func.func @transform_1(%arg0: i32) -> (i32, i32) {
    %c0_i32 = arith.constant 0 : i32
    %c0_i32_0 = arith.constant 0 : i32
    %c0_i32_1 = arith.constant 0 : i32
    return %c0_i32, %c0_i32_0 : i32, i32
  }
  func.func @transform_2(%arg0: i32) -> (i32, i32) {
    %c0_i32 = arith.constant 0 : i32
    %c0_i32_0 = arith.constant 0 : i32
    %c0_i32_1 = arith.constant 0 : i32
    return %c0_i32, %c0_i32_0 : i32, i32
  }
  func.func @transform_3(%arg0: i32) -> (i32, i32) {
    %c0_i32 = arith.constant 0 : i32
    %c0_i32_0 = arith.constant 0 : i32
    %c0_i32_1 = arith.constant 0 : i32
    return %c0_i32, %c0_i32_0 : i32, i32
  }
  func.func @transform_4(%arg0: i32) -> (i32, i32) {
    %c0_i32 = arith.constant 0 : i32
    %c0_i32_0 = arith.constant 0 : i32
    %c0_i32_1 = arith.constant 0 : i32
    return %c0_i32, %c0_i32_0 : i32, i32
  }
  func.func @transform_5(%arg0: i32) -> (i32, i32) {
    %c0_i32 = arith.constant 0 : i32
    %c0_i32_0 = arith.constant 0 : i32
    %c0_i32_1 = arith.constant 0 : i32
    return %c0_i32, %c0_i32_0 : i32, i32
  }
  func.func @transform_6(%arg0: i32) -> (i32, i32) {
    %c0_i32 = arith.constant 0 : i32
    %c0_i32_0 = arith.constant 0 : i32
    %c0_i32_1 = arith.constant 0 : i32
    return %c0_i32, %c0_i32_0 : i32, i32
  }
  func.func @transform_7(%arg0: i32) -> (i32, i32) {
    %c0_i32 = arith.constant 0 : i32
    %c0_i32_0 = arith.constant 0 : i32
    %c0_i32_1 = arith.constant 0 : i32
    return %c0_i32, %c0_i32_0 : i32, i32
  }
  func.func @transform_8(%arg0: i32) -> (i32, i32) {
    %c0_i32 = arith.constant 0 : i32
    %c0_i32_0 = arith.constant 0 : i32
    %c0_i32_1 = arith.constant 0 : i32
    return %c0_i32, %c0_i32_0 : i32, i32
  }
  func.func @transform_9(%arg0: i32) -> (i32, i32) {
    %c0_i32 = arith.constant 0 : i32
    %c0_i32_0 = arith.constant 0 : i32
    %c0_i32_1 = arith.constant 0 : i32
    return %c0_i32, %c0_i32_0 : i32, i32
  }
  func.func @transform_10(%arg0: i32) -> (i32, i32) {
    %c0_i32 = arith.constant 0 : i32
    %c0_i32_0 = arith.constant 0 : i32
    %c0_i32_1 = arith.constant 0 : i32
    return %c0_i32, %c0_i32_0 : i32, i32
  }
  func.func @transform_11(%arg0: i32) -> (i32, i32) {
    %c0_i32 = arith.constant 0 : i32
    %c0_i32_0 = arith.constant 0 : i32
    %c0_i32_1 = arith.constant 0 : i32
    return %c0_i32, %c0_i32_0 : i32, i32
  }
  func.func @transform_12(%arg0: i32) -> (i32, i32) {
    %c0_i32 = arith.constant 0 : i32
    %c0_i32_0 = arith.constant 0 : i32
    %c0_i32_1 = arith.constant 0 : i32
    return %c0_i32, %c0_i32_0 : i32, i32
  }
  func.func @transform_13(%arg0: i32) -> (i32, i32, i32) {
    %c0_i32 = arith.constant 0 : i32
    %c0_i32_0 = arith.constant 0 : i32
    %c0_i32_1 = arith.constant 0 : i32
    return %arg0, %c0_i32, %c0_i32_0 : i32, i32, i32
  }
}

</mosaic_0001>

<bundles_post_ra>
// kernel: tpu_custom_call.1
= control target key start
LH: loop header
LB: loop body
LE: loop exit
PB: predicated region body
PF: predicated region fallthrough
CT: control target
= control target key end

     0   :  { %s2697_s0 = inlined_call_operand.vmem [shape: f32[2,8,32], index: 0, kind: input, shape index: {}]   ;;  %s2698_s1 = inlined_call_operand.vmem [shape: f32[1,32], index: 1, kind: input, shape index: {}]   ;;  %s2699_s2 = inlined_call_operand.vmem [shape: f32[1,32], index: 2, kind: input, shape index: {}]   ;;  %s2700_s3 = inlined_call_operand.vmem [shape: bf16[32,96], index: 3, kind: input, shape index: {}]   ;;  %s2701_s4 = inlined_call_operand.vmem [shape: f32[1,96], index: 4, kind: input, shape index: {}]   ;;  %s2702_s5 = inlined_call_operand.vmem [shape: bf16[32,32], index: 5, kind: input, shape index: {}]   ;;  %s2703_s6 = inlined_call_operand.vmem [shape: f32[1,32], index: 6, kind: input, shape index: {}]   ;;  %s2704_s7 = inlined_call_operand.vmem [shape: f32[1,32], index: 7, kind: input, shape index: {}]   ;;  %s2705_s8 = inlined_call_operand.vmem [shape: f32[1,32], index: 8, kind: input, shape index: {}]   ;;  %s2706_s9 = inlined_call_operand.vmem [shape: bf16[32,128], index: 9, kind: input, shape index: {}]   ;;  %s2707_s10 = inlined_call_operand.vmem [shape: f32[1,128], index: 10, kind: input, shape index: {}]   ;;  %s2708_s11 = inlined_call_operand.vmem [shape: bf16[128,32], index: 11, kind: input, shape index: {}]   ;;  %s2709_s12 = inlined_call_operand.vmem [shape: f32[1,32], index: 12, kind: input, shape index: {}]   ;;  %s2710_s13 = inlined_call_operand.hbm [shape: f32[2,8,32], index: 13, kind: output, shape index: {}]  }
   0x1   :  { %2711 = sst [smem:[#allocation5_spill]] %s2697_s0 }
   0x2   :  { %2712 = sst [smem:[#allocation6_spill]] %s2698_s1 }
   0x3   :  { %2713 = sst [smem:[#allocation7_spill]] %s2699_s2 }
   0x4   :  { %18 = vsyncpa [#allocation3], 0 }
   0x5   :  { %20 = vsyncpa [#allocation3 + $0x1], 0  ;;  %s2331_s25 = smov 0   ;;  %s2333_s26 = smov 0  }
   0x6   :  { %s2335_s27 = smov 0   ;;  %s2337_s28 = smov 0  }
   0x7 LB: > { %s2352_s29 = sadd.s32 4294967295, %s2246_s28   ;;  %s1918_s30 = sadd.s32 4294967294, %s2246_s28   ;;  %s2246_s28 = sphi %s2337_s28, %s2722_s28   ;;  %s2242_s27 = sphi %s2335_s27, %s2721_s27   ;;  %s2238_s26 = sphi %s2333_s26, %s2720_s26   ;;  %s2234_s25 = sphi %s2331_s25, %s2719_s25  }
   0x8   : > { %s2356_s14 = sadd.s32 1, %s2246_s28   ;;  %s311_s15 = sadd.s32 1, %s2242_s27 }
   0x9   : > { %s308_s16 = ssub.s32 %s2246_s28, %s2356_s14  ;;  %p321_p0 = scmp.ne.s32.totalorder %s2242_s27, %s2238_s26 }
   0xa   : > { %p309_p1 = scmp.eq.s32.totalorder %s308_s16, 0  ;;  %p322_p2 = scmp.eq.s32.totalorder %s2352_s29, 1 }
   0xb   : > { %p327_p3 = scmp.ne.s32.totalorder %s2238_s26, %s2234_s25  ;;  %p328_p4 = scmp.eq.s32.totalorder %s1918_s30, 1 }
   0xc   : > { %s2367_s17 = scalar_select %p309_p1, %s2242_s27, %s311_s15  }
   0xd   : > { %p2369_p5 = por %p322_p2, %p321_p0  ;;  %p2373_p6 = por %p328_p4, %p327_p3 }
   0xe   : > { %p1921_p7 = scmp.ge.s32.totalorder %s2246_s28, 1  ;;  %p389_p8 = scmp.lt.s32.totalorder %s2246_s28, 3 }
  0x10   : > { %p390_p9 = pnand %p1921_p7, %p389_p8 }
  0x11   : > { %p432_p10 = scmp.lt.s32.totalorder (!%p390_p9), %s2352_s29, 1  ;;  %vm440_vm0 = vcmask (!%p390_p9), 261120   ;;  %s2716_s0 = sld [smem:[#allocation5_spill]] (!%p390_p9)  ;;  %v2146_v7 = vld [vmem:[%s2700_s3] sm:$0xff] (!%p390_p9)   ;;  %v2248_v8 = vmov (!%p390_p9), 0.0   ;;  %vm2249_vm1 = vmmov (!%p390_p9), 0   ;;  %v551_v31 = vlaneseq (!%p390_p9) }
  0x12   : > { %393 = sbr.rel (%p390_p9) target bundleno = 2773 (0xad5), region = 72  ;;  %2003 = vmatprep.subr.bf16.mxu0 (!%p390_p9), %v2248_v8  ;;  %2007 = vmatprep.mubr.msk.bf16.mxu0 (!%p390_p9), %vm2249_vm1, %v2248_v8  ;;  %v2147_v9 = vld [vmem:[%s2700_s3 + $0x8] sm:$0xff] (!%p390_p9)   ;;  %s2717_s1 = sld [smem:[#allocation6_spill]] (!%p390_p9)  ;;  %v1926_v20 = vld [vmem:[%s2701_s4] ss:$0 sm:$0xff] (!%p390_p9)  ;;  %vm986_vm2 = vcmask (!%p390_p9), 64512  }
  0x13   : > { %2004 = vmatpush3.bf16.msra.mxu0 (!%p390_p9), %v2146_v7  ;;  %2023 = vmatprep.subr.bf16.mxu1 (!%p390_p9), %v2248_v8  ;;  %s2718_s2 = sld [smem:[#allocation7_spill]] (!%p390_p9)  ;;  %s2250_s16 = smov (!%p390_p9), 104   ;;  %v2254_v29 = vmov (!%p390_p9), 1983009808   ;;  %v552_v33 = vshrl.u32 (!%p390_p9), %v551_v31, 7  ;;  %vm1226_vm3 = vcmask (!%p390_p9), 1043456  }
  0x14   : > { %2005 = vmatprep.subr.bf16.mxu0 (!%p390_p9), %v2248_v8  ;;  %2025 = vmatprep.mubr.msk.bf16.mxu1 (!%p390_p9), %vm2249_vm1, %v2248_v8  ;;  %s2253_s22 = smov (!%p390_p9), 96   ;;  %v549_v30 = vunpack.c.l.s4 (!%p390_p9), %v2254_v29  ;;  %v2255_v35 = vmov (!%p390_p9), 1934713408   ;;  %s2256_s23 = smov (!%p390_p9), 64   ;;  %vm1557_vm4 = vcmask (!%p390_p9), 130048   ;;  %vm1559_vm5 = vcmask (!%p390_p9), 195584  }
  0x15   : > { %v581_v36 = vunpack.c.l.s4 (!%p390_p9), %v2255_v35 }
  0x16   : > { %v550_v32 = vunpack.c.0.s8 (!%p390_p9), %v549_v30 }
  0x17   : > { %2006 = vmatpush3.bf16.msra.mxu0 (!%p390_p9), %v2147_v9  ;;  %v582_v43 = vunpack.c.0.s8 (!%p390_p9), %v581_v36 }
  0x18   : > { %2011 = vmatprep.subr.bf16.mxu0 (!%p390_p9), %v2248_v8  ;;  %v1924_v14 = vld [vmem:[%s2717_s1] ss:$0 sm:$0xff] (!%p390_p9)  ;;  %v2435_v39 = vsub.s32 (!%p390_p9), %v550_v32, %v552_v33 }
  0x19   : > { %s433_s20 = scalar_select %p432_p10, %s2352_s29, 1  ;;  %v1925_v16 = vld [vmem:[%s2718_s2] ss:$0 sm:$0xff]  ;;  %v2445_v49 = vsub.s32 %v582_v43, %v552_v33 }
  0x1b   : > { %s1923_s21 = sshll.u32 %s433_s20, 3  ;;  %s2251_s20 = smov 120  }
  0x1c   : > { %s435_s24 = scalar_lea.vmem %s2716_s0, %s1923_s21  ;;  %s2252_s21 = smov 112  }
  0x1d   : > { %v2384_v0 = vld [vmem:[%s435_s24] sm:$0xff] }
  0x1e   : > { %v441_v1 = vsel %vm440_vm0, %v2384_v0, 0.0 }
  0x1f   : > { %442 = vadd.xlane.f32.xlu0 %v441_v1 }
  0xac   : > { %v443_v2 = vpop.xlane.xlu0 %442 }
  0xad   : > { %v445_v3 = vmul.f32 0.03125, %v443_v2 }
  0xaf   : > { %v446_v4 = vsub.f32 %v2384_v0, %v445_v3 }
  0xb1   : > { %v447_v5 = vmul.f32 %v446_v4, %v446_v4 }
  0xb3   : > { %v448_v6 = vsel %vm440_vm0, %v447_v5, 0.0 }
  0xb4   : > { %449 = vadd.xlane.f32.xlu0 %v448_v6 }
 0x141   : > { %v450_v10 = vpop.xlane.xlu0 %449 }
 0x142   : > { %v451_v11 = vmul.f32 0.03125, %v450_v10 }
 0x144   : > { %v452_v12 = vadd.f32 1e-05, %v451_v11 }
 0x146   : > { %2160 = vrsqrt.f32 %v452_v12 }
 0x150   : > { %v2161_v13 = vpop.eup %2160 }
 0x151   : > { %v454_v15 = vmul.f32 %v2161_v13, %v446_v4 }
 0x153   : > { %v461_v17 = vmul.f32 %v1924_v14, %v454_v15 }
 0x155   : > { %v468_v18 = vadd.f32 %v1925_v16, %v461_v17 }
 0x157   : > { %v469_v19 = vpack.c.bf16 %v468_v18, %v468_v18 }
 0x159   : > { %2008 = vmatmul.mubr.msk.bf16.vlgmr.msra.gmra.mrb[0].mxu0 %vm440_vm0, %v469_v19 }
 0x15a   : > { %2013 = vmatprep.mubr.msk.bf16.mxu0 %vm2249_vm1, %v2248_v8 }
 0x22c   : > { %v530_v21 = vpop.f32.mrb[0].mxu0 }
 0x22d   : > { %v2416_v22 = vadd.f32 %v1926_v20, %v530_v21  ;;  %v2009_v23 = vpop.f32.mrb[1].mxu0 }
 0x22e   : > { %v533_v24 = vpop.f32.mrb[2].mxu0 }
 0x22f   : > { %543 = vrot.lane.b32.xlu0 %v2416_v22, %s2250_s16  ;;  %537 = vrot.lane.b32.xlu1 %v2416_v22, %s2251_s20  ;;  %v2010_v25 = vpop.f32.mrb[3].mxu0  ;;  %s2257_s20 = smov 16   ;;  %s429_s16 = sand.u32 1, %s2238_s26  }
 0x233   : > { %540 = vrot.lane.b32.xlu1 %v2416_v22, %s2252_s21  ;;  %s2258_s21 = smov 8  }
 0x237   : > { %682 = vrot.lane.b32.xlu1 %v2416_v22, %s2253_s22 }
 0x2a1   : > { %v2422_v26 = vpop.permute.xlu1 %537  ;;  %v2428_v28 = vpop.permute.xlu0 %543 }
 0x2a2   : > { %684 = vrot.lane.b32.xlu1 %v2422_v26, %s2253_s22  ;;  %v562_v40 = vcombine.low %v2422_v26, %v2428_v28  ;;  %v563_v41 = vcombine.high %v2422_v26, %v2428_v28 }
 0x2a4   : > { %v570_v46 = vrot.slane %v562_v40, %v2435_v39  ;;  %v577_v47 = vrot.slane %v563_v41, %v2435_v39 }
 0x2a5   : > { %v2425_v27 = vpop.permute.xlu1 %540 }
 0x2a6   : > { %686 = vrot.lane.b32.xlu1 %v2425_v27, %s2253_s22  ;;  %v546_v37 = vcombine.low %v2416_v22, %v2425_v27  ;;  %v547_v38 = vcombine.high %v2416_v22, %v2425_v27 }
 0x2a8   : > { %v554_v44 = vrot.slane %v546_v37, %v2435_v39  ;;  %v561_v45 = vrot.slane %v547_v38, %v2435_v39 }
 0x2a9   : > { %v683_v34 = vpop.permute.xlu1 %682 }
 0x2aa   : > { %688 = vrot.lane.b32.xlu1 %v2428_v28, %s2253_s22  ;;  %v578_v50 = vcombine.low %v554_v44, %v570_v46  ;;  %v579_v51 = vcombine.high %v554_v44, %v570_v46  ;;  %v594_v52 = vcombine.low %v561_v45, %v577_v47  ;;  %v595_v53 = vcombine.high %v561_v45, %v577_v47  ;;  %s2259_s22 = smov 24  }
 0x2ac   : > { %v586_v59 = vrot.slane %v578_v50, %v2445_v49  ;;  %v593_v60 = vrot.slane %v579_v51, %v2445_v49  ;;  %v602_v61 = vrot.slane %v594_v52, %v2445_v49  ;;  %v609_v62 = vrot.slane %v595_v53, %v2445_v49 }
 0x2ae   : > { %v614_v9 = vcombine.low %v586_v59, %v593_v60  ;;  %v1930_v10 = vcombine.high %v586_v59, %v593_v60  ;;  %v630_v11 = vcombine.low %v602_v61, %v609_v62  ;;  %v1931_v12 = vcombine.high %v602_v61, %v609_v62 }
 0x2b0   : > { %v621_v21 = vrot.slane %v614_v9, %v2435_v39  ;;  %v629_v23 = vrot.slane %v1930_v10, %v2435_v39  ;;  %v637_v24 = vrot.slane %v630_v11, %v2435_v39  ;;  %v645_v25 = vrot.slane %v1931_v12, %v2435_v39 }
 0x2b2   : > { %v646_v37 = vcombine.low %v621_v21, %v629_v23  ;;  %v662_v38 = vcombine.low %v637_v24, %v645_v25  ;;  %v647_v40 = vcombine.high %v621_v21, %v629_v23  ;;  %v663_v41 = vcombine.high %v637_v24, %v645_v25 }
 0x2b4   : > { %v670_v50 = vrot.slane %v662_v38, %v2445_v49  ;;  %v661_v53 = vrot.slane %v647_v40, %v2445_v49 }
 0x314   : > { %v685_v42 = vpop.permute.xlu1 %684 }
 0x318   : > { %v687_v48 = vpop.permute.xlu1 %686 }
 0x319   : > { %v694_v54 = vcombine.low %v683_v34, %v687_v48  ;;  %v695_v55 = vcombine.high %v683_v34, %v687_v48  ;;  %v654_v48 = vrot.slane %v646_v37, %v2445_v49 }
 0x31b   : > { %v702_v63 = vrot.slane %v694_v54, %v2435_v39  ;;  %v709_v1 = vrot.slane %v695_v55, %v2435_v39  ;;  %v677_v54 = vrot.slane %v663_v41, %v2445_v49 }
 0x31c   : > { %v689_v56 = vpop.permute.xlu1 %688 }
 0x31d   : > { %v710_v57 = vcombine.low %v685_v42, %v689_v56  ;;  %v711_v58 = vcombine.high %v685_v42, %v689_v56  ;;  %v680_v59 = vcombine.low %v661_v53, %v677_v54 }
 0x31f   : > { %v718_v2 = vrot.slane %v710_v57, %v2435_v39  ;;  %v725_v3 = vrot.slane %v711_v58, %v2435_v39  ;;  %v678_v58 = vcombine.low %v654_v48, %v670_v50  ;;  %v980_v62 = vpack.c.bf16 %v680_v59, %v680_v59 }
 0x321   : > { %v726_v4 = vcombine.low %v702_v63, %v718_v2  ;;  %v727_v5 = vcombine.high %v702_v63, %v718_v2  ;;  %v742_v6 = vcombine.low %v709_v1, %v725_v3  ;;  %v743_v7 = vcombine.high %v709_v1, %v725_v3 }
 0x322   : > { %v978_v61 = vpack.c.bf16 %v678_v58, %v678_v58  ;;  %v679_v2 = vcombine.high %v654_v48, %v670_v50 }
 0x323   : > { %v734_v13 = vrot.slane %v726_v4, %v2445_v49  ;;  %v741_v14 = vrot.slane %v727_v5, %v2445_v49  ;;  %v750_v15 = vrot.slane %v742_v6, %v2445_v49  ;;  %v757_v16 = vrot.slane %v743_v7, %v2445_v49 }
 0x324   : > { %v979_v4 = vpack.c.bf16 %v679_v2, %v679_v2  ;;  %v681_v6 = vcombine.high %v661_v53, %v677_v54 }
 0x325   : > { %v762_v17 = vcombine.low %v734_v13, %v741_v14  ;;  %v1932_v18 = vcombine.high %v734_v13, %v741_v14  ;;  %v778_v19 = vcombine.low %v750_v15, %v757_v16  ;;  %v1933_v20 = vcombine.high %v750_v15, %v757_v16 }
 0x326   : > { %v981_v7 = vpack.c.bf16 %v681_v6, %v681_v6 }
 0x327   : > { %v769_v29 = vrot.slane %v762_v17, %v2435_v39  ;;  %v777_v30 = vrot.slane %v1932_v18, %v2435_v39  ;;  %v785_v31 = vrot.slane %v778_v19, %v2435_v39  ;;  %v793_v32 = vrot.slane %v1933_v20, %v2435_v39 }
 0x329   : > { %v794_v33 = vcombine.low %v769_v29, %v777_v30  ;;  %v810_v34 = vcombine.low %v785_v31, %v793_v32  ;;  %v795_v35 = vcombine.high %v769_v29, %v777_v30  ;;  %v811_v36 = vcombine.high %v785_v31, %v793_v32 }
 0x32b   : > { %v802_v42 = vrot.slane %v794_v33, %v2445_v49  ;;  %v818_v43 = vrot.slane %v810_v34, %v2445_v49  ;;  %v809_v44 = vrot.slane %v795_v35, %v2445_v49  ;;  %v825_v45 = vrot.slane %v811_v36, %v2445_v49 }
 0x32d   : > { %v826_v46 = vcombine.low %v802_v42, %v818_v43  ;;  %v828_v47 = vcombine.low %v809_v44, %v825_v45  ;;  %v827_v57 = vcombine.high %v802_v42, %v818_v43  ;;  %v829_v1 = vcombine.high %v809_v44, %v825_v45 }
 0x32f   : > { %v982_v51 = vpack.c.bf16 %v826_v46, %v826_v46  ;;  %v984_v52 = vpack.c.bf16 %v828_v47, %v828_v47  ;;  %v983_v60 = vpack.c.bf16 %v827_v57, %v827_v57  ;;  %v985_v3 = vpack.c.bf16 %v829_v1, %v829_v1 }
 0x331   : > { %v991_v55 = vsel %vm986_vm2, %v982_v51, 0  ;;  %v1083_v56 = vsel %vm986_vm2, %v984_v52, 0  ;;  %v1037_v63 = vsel %vm986_vm2, %v983_v60, 0  ;;  %v1129_v5 = vsel %vm986_vm2, %v985_v3, 0 }
 0x332   : > { %2012 = vmatpush3.bf16.xpose.msra.mxu0 %v991_v55  ;;  %2024 = vmatpush3.bf16.xpose.msra.mxu1 %v1083_v56 }
 0x333   : > { %2017 = vmatprep.subr.bf16.mxu0 %v2248_v8  ;;  %2035 = vmatprep.subr.bf16.mxu1 %v2248_v8 }
 0x339   : > { %2014 = vmatmul.mubr.msk.bf16.vlgmr.msra.gmra.mrb[4].mxu0 %vm986_vm2, %v978_v61  ;;  %2026 = vmatmul.mubr.msk.bf16.vlgmr.msra.gmra.mrb[0].mxu1 %vm986_vm2, %v980_v62 }
 0x33a   : > { %2018 = vmatpush3.bf16.xpose.msra.mxu0 %v1037_v63  ;;  %2019 = vmatprep.mubr.msk.bf16.mxu0 %vm2249_vm1, %v2248_v8 }
 0x33b   : > { %2029 = vmatprep.subr.bf16.mxu0 %v2248_v8  ;;  %2037 = vmatprep.mubr.msk.bf16.mxu1 %vm2249_vm1, %v2248_v8 }
 0x341   : > { %2020 = vmatmul.mubr.msk.bf16.vlgmr.msra.gmra.mrb[8].mxu0 %vm986_vm2, %v979_v4 }
 0x342   : > { %2030 = vmatpush3.bf16.xpose.msra.mxu0 %v1129_v5  ;;  %2031 = vmatprep.mubr.msk.bf16.mxu0 %vm2249_vm1, %v2248_v8 }
 0x343   : > { %2041 = vmatprep.subr.bf16.mxu0 %v2248_v8 }
 0x349   : > { %2032 = vmatmul.mubr.msk.bf16.vlgmr.msra.gmra.mrb[12].mxu0 %vm986_vm2, %v981_v7 }
 0x34a   : > { %2043 = vmatprep.mubr.msk.bf16.mxu0 %vm2249_vm1, %v2248_v8 }
 0x40c   : > { %v1027_v9 = vpop.f32.mrb[4].mxu0  ;;  %v1119_v10 = vpop.f32.mrb[0].mxu1 }
 0x40d   : > { %v2015_v11 = vpop.f32.mrb[5].mxu0  ;;  %v2027_v12 = vpop.f32.mrb[1].mxu1  ;;  %v1171_v13 = vsel %vm986_vm2, %v1027_v9, -inf  ;;  %v1177_v18 = vsel %vm986_vm2, %v1119_v10, -inf }
 0x40e   : > { %v1122_v14 = vpop.f32.mrb[2].mxu1  ;;  %1172 = vmax.xlane.f32.xlu1 %v1171_v13  ;;  %v1030_v15 = vpop.f32.mrb[6].mxu0 }
 0x40f   : > { %v2016_v16 = vpop.f32.mrb[7].mxu0  ;;  %v2028_v17 = vpop.f32.mrb[3].mxu1 }
 0x412   : > { %1178 = vmax.xlane.f32.xlu1 %v1177_v18 }
 0x414   : > { %v1073_v19 = vpop.f32.mrb[8].mxu0 }
 0x415   : > { %v2021_v20 = vpop.f32.mrb[9].mxu0  ;;  %v1174_v21 = vsel %vm986_vm2, %v1073_v19, -inf }
 0x416   : > { %1175 = vmax.xlane.f32.xlu0 %v1174_v21  ;;  %v1076_v23 = vpop.f32.mrb[10].mxu0 }
 0x417   : > { %v2022_v24 = vpop.f32.mrb[11].mxu0 }
 0x41c   : > { %v1165_v25 = vpop.f32.mrb[12].mxu0 }
 0x41d   : > { %v2033_v29 = vpop.f32.mrb[13].mxu0  ;;  %v1180_v30 = vsel %vm986_vm2, %v1165_v25, -inf }
 0x41e   : > { %1181 = vmax.xlane.f32.xlu0 %v1180_v30  ;;  %v1168_v31 = vpop.f32.mrb[14].mxu0 }
 0x41f   : > { %v2034_v32 = vpop.f32.mrb[15].mxu0 }
 0x423   : > { %830 = vrot.lane.b32.xlu1 %v2416_v22, %s2256_s23 }
 0x49b   : > { %v1173_v33 = vpop.xlane.xlu1 %1172 }
 0x49c   : > { %v1183_v34 = vsub.f32 %v1027_v9, %v1173_v33 }
 0x49e   : > { %v1187_v35 = vmul.f32 1.442695, %v1183_v34 }
 0x49f   : > { %v1179_v45 = vpop.xlane.xlu1 %1178 }
 0x4a0   : > { %2162 = vpow2.f32 %v1187_v35  ;;  %v1185_v46 = vsub.f32 %v1119_v10, %v1179_v45 }
 0x4a2   : > { %v1191_v48 = vmul.f32 1.442695, %v1185_v46 }
 0x4a3   : > { %v1176_v36 = vpop.xlane.xlu0 %1175 }
 0x4a4   : > { %v1184_v37 = vsub.f32 %v1073_v19, %v1176_v36 }
 0x4a6   : > { %v1189_v38 = vmul.f32 1.442695, %v1184_v37 }
 0x4a8   : > { %2164 = vpow2.f32 %v1189_v38 }
 0x4aa   : > { %v2500_v40 = vpop.eup %2162 }
 0x4ab   : > { %v1195_v41 = vsel %vm986_vm2, %v2500_v40, 0.0  ;;  %v1182_v22 = vpop.xlane.xlu0 %1181 }
 0x4ac   : > { %1196 = vadd.xlane.f32.xlu1 %v1195_v41  ;;  %v1186_v44 = vsub.f32 %v1165_v25, %v1182_v22 }
 0x4ae   : > { %v1193_v47 = vmul.f32 1.442695, %v1186_v44 }
 0x4b0   : > { %2166 = vpow2.f32 %v1193_v47 }
 0x4b1   : > { %2168 = vpow2.f32 %v1191_v48 }
 0x4b2   : > { %v2504_v42 = vpop.eup %2164 }
 0x4b3   : > { %v1198_v43 = vsel %vm986_vm2, %v2504_v42, 0.0 }
 0x4b4   : > { %1199 = vadd.xlane.f32.xlu0 %v1198_v43 }
 0x4ba   : > { %v2511_v50 = vpop.eup %2166 }
 0x4bb   : > { %v1204_v51 = vsel %vm986_vm2, %v2511_v50, 0.0  ;;  %v2515_v52 = vpop.eup %2168 }
 0x4bd   : > { %834 = vrot.lane.b32.xlu1 %v2425_v27, %s2256_s23  ;;  %v1201_v27 = vsel %vm986_vm2, %v2515_v52, 0.0 }
 0x4c1   : > { %836 = vrot.lane.b32.xlu1 %v2428_v28, %s2256_s23 }
 0x4ca   : > { %832 = vrot.lane.b32.xlu0 %v2422_v26, %s2256_s23  ;;  %v831_v26 = vpop.permute.xlu1 %830  ;;  %s1966_s23 = sshll.u32 %s2352_s29, 7  ;;  %s1846_s29 = scalar_lea.sflag [#allocation3], %s429_s16 }
 0x4cb   : > { %s2654_s1 = scalar_lea.hbm %s2710_s13, %s1966_s23 }
 0x4e5   : > { %1205 = vadd.xlane.f32.xlu1 %v1204_v51 }
 0x4e9   : > { %1202 = vadd.xlane.f32.xlu0 %v1201_v27 }
 0x539   : > { %v1197_v28 = vpop.xlane.xlu1 %1196 }
 0x53a   : > { %2170 = vrcp.f32 %v1197_v28 }
 0x53d   : > { %v835_v53 = vpop.permute.xlu1 %834 }
 0x53e   : > { %v842_v55 = vcombine.low %v831_v26, %v835_v53  ;;  %v843_v56 = vcombine.high %v831_v26, %v835_v53 }
 0x540   : > { %v850_v61 = vrot.slane %v842_v55, %v2435_v39  ;;  %v857_v62 = vrot.slane %v843_v56, %v2435_v39 }
 0x541   : > { %v1200_v54 = vpop.xlane.xlu0 %1199  ;;  %v837_v57 = vpop.permute.xlu1 %836 }
 0x542   : > { %2172 = vrcp.f32 %v1200_v54 }
 0x544   : > { %v2171_v24 = vpop.eup %2170 }
 0x545   : > { %v833_v58 = vpop.permute.xlu0 %832  ;;  %v1211_v37 = vmul.f32 %v2171_v24, %v2500_v40 }
 0x546   : > { %v858_v59 = vcombine.low %v833_v58, %v837_v57  ;;  %v859_v60 = vcombine.high %v833_v58, %v837_v57 }
 0x547   : > { %v1215_v47 = vpack.c.bf16 %v1211_v37, %v1211_v37 }
 0x548   : > { %v866_v63 = vrot.slane %v858_v59, %v2435_v39  ;;  %v873_v1 = vrot.slane %v859_v60, %v2435_v39 }
 0x54a   : > { %v874_v2 = vcombine.low %v850_v61, %v866_v63  ;;  %v875_v3 = vcombine.high %v850_v61, %v866_v63  ;;  %v890_v4 = vcombine.low %v857_v62, %v873_v1  ;;  %v891_v5 = vcombine.high %v857_v62, %v873_v1 }
 0x54c   : > { %v882_v6 = vrot.slane %v874_v2, %v2445_v49  ;;  %v889_v7 = vrot.slane %v875_v3, %v2445_v49  ;;  %v898_v9 = vrot.slane %v890_v4, %v2445_v49  ;;  %v905_v10 = vrot.slane %v891_v5, %v2445_v49  ;;  %v2173_v32 = vpop.eup %2172 }
 0x54d   : > { %v1212_v38 = vmul.f32 %v2173_v32, %v2504_v42 }
 0x54e   : > { %v910_v11 = vcombine.low %v882_v6, %v889_v7  ;;  %v1934_v12 = vcombine.high %v882_v6, %v889_v7  ;;  %v926_v13 = vcombine.low %v898_v9, %v905_v10  ;;  %v1935_v14 = vcombine.high %v898_v9, %v905_v10 }
 0x54f   : > { %v1216_v48 = vpack.c.bf16 %v1212_v38, %v1212_v38 }
 0x550   : > { %v917_v15 = vrot.slane %v910_v11, %v2435_v39  ;;  %v925_v16 = vrot.slane %v1934_v12, %v2435_v39  ;;  %v933_v17 = vrot.slane %v926_v13, %v2435_v39  ;;  %v941_v18 = vrot.slane %v1935_v14, %v2435_v39 }
 0x552   : > { %v942_v19 = vcombine.low %v917_v15, %v925_v16  ;;  %v958_v20 = vcombine.low %v933_v17, %v941_v18  ;;  %v943_v21 = vcombine.high %v917_v15, %v925_v16  ;;  %v959_v23 = vcombine.high %v933_v17, %v941_v18  ;;  %v2148_v17 = vld [vmem:[%s2702_s5] sm:$0xff]  }
 0x554   : > { %v950_v25 = vrot.slane %v942_v19, %v2445_v49  ;;  %v966_v29 = vrot.slane %v958_v20, %v2445_v49  ;;  %v957_v30 = vrot.slane %v943_v21, %v2445_v49  ;;  %v973_v31 = vrot.slane %v959_v23, %v2445_v49 }
 0x556   : > { %v974_v33 = vcombine.low %v950_v25, %v966_v29  ;;  %v975_v34 = vcombine.high %v950_v25, %v966_v29  ;;  %v976_v35 = vcombine.low %v957_v30, %v973_v31  ;;  %v977_v36 = vcombine.high %v957_v30, %v973_v31  ;;  %v2149_v30 = vld [vmem:[%s2702_s5 + $0x8] sm:$0xff]  }
 0x558   : > { %v1219_v41 = vpack.c.bf16 %v974_v33, %v974_v33  ;;  %v1220_v43 = vpack.c.bf16 %v975_v34, %v975_v34  ;;  %v1221_v45 = vpack.c.bf16 %v976_v35, %v976_v35  ;;  %v1222_v46 = vpack.c.bf16 %v977_v36, %v977_v36 }
 0x55a   : > { %v1228_v22 = vsel %vm1226_vm3, %v1219_v41, 0  ;;  %v1274_v44 = vsel %vm1226_vm3, %v1220_v43, 0  ;;  %v1320_v40 = vsel %vm1226_vm3, %v1221_v45, 0  ;;  %v1366_v42 = vsel %vm1226_vm3, %v1222_v46, 0 }
 0x55b   : > { %2036 = vmatpush3.bf16.msra.mxu1 %v1228_v22  ;;  %2042 = vmatpush3.bf16.msra.mxu0 %v1274_v44 }
 0x55c   : > { %2047 = vmatprep.subr.bf16.mxu1 %v2248_v8  ;;  %2053 = vmatprep.subr.bf16.mxu0 %v2248_v8 }
 0x55e   : > { %2038 = vmatmul.mubr.msk.bf16.vlgmr.msra.gmra.mrb[4].mxu1 %vm986_vm2, %v1215_v47  ;;  %2044 = vmatmul.mubr.msk.bf16.vlgmr.msra.gmra.mrb[16].mxu0 %vm986_vm2, %v1216_v48 }
 0x55f   : > { %2048 = vmatpush3.bf16.msra.mxu1 %v1320_v40  ;;  %2054 = vmatpush3.bf16.msra.mxu0 %v1366_v42 }
 0x560   : > { %2055 = vmatprep.mubr.msk.bf16.mxu0 %vm2249_vm1, %v2248_v8  ;;  %2049 = vmatprep.mubr.msk.bf16.mxu1 %vm2249_vm1, %v2248_v8 }
 0x561   : > { %2059 = vmatprep.subr.bf16.mxu1 %v2248_v8  ;;  %2067 = vmatprep.subr.bf16.mxu0 %v2248_v8 }
 0x572   : > { %v1206_v51 = vpop.xlane.xlu1 %1205 }
 0x573   : > { %2174 = vrcp.f32 %v1206_v51 }
 0x576   : > { %v1203_v27 = vpop.xlane.xlu0 %1202 }
 0x577   : > { %2176 = vrcp.f32 %v1203_v27 }
 0x57d   : > { %v2175_v26 = vpop.eup %2174 }
 0x57e   : > { %v1214_v28 = vmul.f32 %v2175_v26, %v2511_v50 }
 0x580   : > { %v1218_v53 = vpack.c.bf16 %v1214_v28, %v1214_v28 }
 0x581   : > { %v2177_v54 = vpop.eup %2176 }
 0x582   : > { %v1213_v55 = vmul.f32 %v2177_v54, %v2515_v52  ;;  %2056 = vmatmul.mubr.msk.bf16.vlgmr.msra.gmra.mrb[20].mxu0 %vm986_vm2, %v1218_v53 }
 0x583   : > { %2071 = vmatprep.mubr.msk.bf16.mxu0 %vm2249_vm1, %v2248_v8 }
 0x584   : > { %v1217_v56 = vpack.c.bf16 %v1213_v55, %v1213_v55 }
 0x586   : > { %2050 = vmatmul.mubr.msk.bf16.vlgmr.msra.gmra.mrb[8].mxu1 %vm986_vm2, %v1217_v56  ;;  %v1946_v56 = vld [vmem:[%s2703_s6] ss:$0 sm:$0xff] }
 0x587   : > { %2063 = vmatprep.mubr.msk.bf16.mxu1 %vm2249_vm1, %v2248_v8  ;;  %2060 = vmatpush3.bf16.msra.mxu1 %v2148_v17  ;;  %v2153_v17 = vld [vmem:[%s2708_s11 + $0x8] sm:$0xff]  }
 0x588   : > { %2061 = vmatprep.subr.bf16.mxu1 %v2248_v8 }
 0x58b   : > { %2062 = vmatpush3.bf16.msra.mxu1 %v2149_v30 }
 0x58c   : > { %2075 = vmatprep.subr.bf16.mxu1 %v2248_v8 }
 0x631   : > { %v1264_v57 = vpop.f32.mrb[4].mxu1  ;;  %v1310_v58 = vpop.f32.mrb[16].mxu0 }
 0x632   : > { %v2039_v59 = vpop.f32.mrb[5].mxu1  ;;  %v2045_v60 = vpop.f32.mrb[17].mxu0 }
 0x633   : > { %v1267_v50 = vpop.f32.mrb[6].mxu1  ;;  %v1313_v61 = vpop.f32.mrb[18].mxu0 }
 0x634   : > { %v2040_v62 = vpop.f32.mrb[7].mxu1  ;;  %v2046_v63 = vpop.f32.mrb[19].mxu0 }
 0x655   : > { %v1402_v52 = vpop.f32.mrb[20].mxu0 }
 0x656   : > { %v1424_v1 = vcombine.low %v1310_v58, %v1402_v52  ;;  %v1425_v2 = vcombine.high %v1310_v58, %v1402_v52  ;;  %v2057_v3 = vpop.f32.mrb[21].mxu0 }
 0x657   : > { %v1405_v4 = vpop.f32.mrb[22].mxu0 }
 0x658   : > { %v2058_v5 = vpop.f32.mrb[23].mxu0  ;;  %v1432_v12 = vrot.slane %v1424_v1, %v2435_v39  ;;  %v1439_v13 = vrot.slane %v1425_v2, %v2435_v39  ;;  %v2150_v4 = vld [vmem:[%s2706_s9] sm:$0xff]  }
 0x659   : > { %v1356_v6 = vpop.f32.mrb[8].mxu1  ;;  %2068 = vmatpush3.bf16.msra.mxu0 %v2150_v4 }
 0x65a   : > { %v1408_v7 = vcombine.low %v1264_v57, %v1356_v6  ;;  %v1409_v9 = vcombine.high %v1264_v57, %v1356_v6  ;;  %v2051_v10 = vpop.f32.mrb[9].mxu1  ;;  %2069 = vmatprep.subr.bf16.mxu0 %v2248_v8 }
 0x65b   : > { %v1359_v11 = vpop.f32.mrb[10].mxu1  ;;  %v1950_v10 = vld [vmem:[%s2704_s7] ss:$0 sm:$0xff] }
 0x65c   : > { %v1416_v14 = vrot.slane %v1408_v7, %v2435_v39  ;;  %v1423_v15 = vrot.slane %v1409_v9, %v2435_v39  ;;  %v2052_v16 = vpop.f32.mrb[11].mxu1 }
 0x65d   : > { %v2152_v16 = vld [vmem:[%s2708_s11] sm:$0xff]  }
 0x65e   : > { %v1440_v18 = vcombine.low %v1416_v14, %v1432_v12  ;;  %v1441_v19 = vcombine.high %v1416_v14, %v1432_v12  ;;  %v1456_v20 = vcombine.low %v1423_v15, %v1439_v13  ;;  %v1457_v21 = vcombine.high %v1423_v15, %v1439_v13  ;;  %v1951_v12 = vld [vmem:[%s2705_s8] ss:$0 sm:$0xff] }
 0x660   : > { %v1448_v23 = vrot.slane %v1440_v18, %v2445_v49  ;;  %v1455_v24 = vrot.slane %v1441_v19, %v2445_v49  ;;  %v1464_v25 = vrot.slane %v1456_v20, %v2445_v49  ;;  %v1471_v29 = vrot.slane %v1457_v21, %v2445_v49  ;;  %v2154_v18 = vld [vmem:[%s2708_s11 + $0x10] sm:$0xff]   ;;  %v2155_v19 = vld [vmem:[%s2708_s11 + $0x18] sm:$0xff]   ;;  %v2156_v20 = vld [vmem:[%s2708_s11 + $0x20] sm:$0xff]  }
 0x661   : > { %v2157_v21 = vld [vmem:[%s2708_s11 + $0x28] sm:$0xff]  }
 0x662   : > { %v1476_v31 = vcombine.low %v1448_v23, %v1455_v24  ;;  %v1944_v32 = vcombine.high %v1448_v23, %v1455_v24  ;;  %v1492_v33 = vcombine.low %v1464_v25, %v1471_v29  ;;  %v1945_v34 = vcombine.high %v1464_v25, %v1471_v29  ;;  %v2158_v23 = vld [vmem:[%s2708_s11 + $0x30] sm:$0xff]   ;;  %v2159_v24 = vld [vmem:[%s2708_s11 + $0x38] sm:$0xff]   ;;  %v1952_v25 = vld [vmem:[%s2707_s10] ss:$0 sm:$0xff] }
 0x664   : > { %v1483_v35 = vrot.slane %v1476_v31, %v2435_v39  ;;  %v1491_v36 = vrot.slane %v1944_v32, %v2435_v39  ;;  %v1499_v37 = vrot.slane %v1492_v33, %v2435_v39  ;;  %v1507_v38 = vrot.slane %v1945_v34, %v2435_v39 }
 0x666   : > { %v1509_v41 = vcombine.high %v1483_v35, %v1491_v36  ;;  %v1525_v43 = vcombine.high %v1499_v37, %v1507_v38  ;;  %v1508_v22 = vcombine.low %v1483_v35, %v1491_v36  ;;  %v1524_v44 = vcombine.low %v1499_v37, %v1507_v38 }
 0x668   : > { %v1523_v45 = vrot.slane %v1509_v41, %v2445_v49  ;;  %v1539_v46 = vrot.slane %v1525_v43, %v2445_v49  ;;  %v1516_v47 = vrot.slane %v1508_v22, %v2445_v49  ;;  %v1532_v48 = vrot.slane %v1524_v44, %v2445_v49  ;;  %v1956_v43 = vld [vmem:[%s2709_s12] ss:$0 sm:$0xff] }
 0x66a   : > { %v1542_v40 = vcombine.low %v1523_v45, %v1539_v46  ;;  %v1541_v42 = vcombine.high %v1516_v47, %v1532_v48  ;;  %v1543_v51 = vcombine.high %v1523_v45, %v1539_v46  ;;  %v1540_v27 = vcombine.low %v1516_v47, %v1532_v48 }
 0x66c   : > { %1549 = vrot.lane.b32.xlu1 %v1542_v40, %s2257_s20  ;;  %1545 = vrot.lane.b32.xlu0 %v1541_v42, %s2258_s21  ;;  %s1922_s20 = sshll.u32 %s429_s16, 3  ;;  %s2260_s21 = smov [#allocation2]  }
 0x66d   : > { %s431_s24 = scalar_lea.vmem [#allocation2], %s1922_s20 }
 0x66e   : > { %s1859_s30 = sshll.u32 %s431_s24, 4  ;;  %s2656_s30 = int_to_ptr.vmem [resolvable:$true] %s1859_s30 }
 0x66f   : > { %s2184_s20 = scalar_lea.vmem %s2656_s30, 128 }
 0x670   : > { %1553 = vrot.lane.b32.xlu0 %v1543_v51, %s2259_s22  ;;  %p2185_p11 = scmp.ne.s32.totalorder %s2656_s30, %s2184_s20  ;;  %s2188_s22 = sshll.u32 %s2260_s21, 4  ;;  %s2189_s22 = int_to_ptr.vmem [resolvable:$false] %s2188_s22 }
 0x671   : > { %s2190_s2 = scalar_lea.vmem %s2189_s22, 256  ;;  %p2191_p0 = scmp.lt.s32.totalorder %s2656_s30, %s2189_s22 }
 0x672   : > { %p2186_p12 = pnand %p2185_p11, %p2369_p5  ;;  %p2192_p1 = scmp.lt.s32.totalorder %s2190_s2, %s2184_s20 }
 0x674   : > { %p2187_p13 = pneg %p2186_p12  ;;  %p2193_p2 = por %p2192_p1, %p2191_p0 }
 0x676   : > { %p2194_p3 = pnand %p2193_p2, %p2187_p13 }
 0x6de   : > { %v1546_v39 = vpop.permute.xlu0 %1545  ;;  %v1550_v26 = vpop.permute.xlu1 %1549 }
 0x6df   : > { %v1556_v28 = vsel %vm986_vm2, %v1540_v27, %v1546_v39 }
 0x6e0   : > { %v1558_v54 = vsel %vm1557_vm4, %v1556_v28, %v1550_v26 }
 0x6e2   : > { %v1554_v53 = vpop.permute.xlu0 %1553 }
 0x6e3   : > { %v1560_v55 = vsel %vm1559_vm5, %v1558_v54, %v1554_v53 }
 0x6e4   : > { %v1561_v49 = vpack.c.bf16 %v1560_v55, %v1560_v55 }
 0x6e6   : > { %2064 = vmatmul.mubr.msk.bf16.vlgmr.msra.gmra.mrb[12].mxu1 %vm440_vm0, %v1561_v49 }
 0x6e7   : > { %2091 = vmatprep.mubr.msk.bf16.mxu1 %vm2249_vm1, %v2248_v8  ;;  %2076 = vmatpush3.bf16.msra.mxu1 %v2152_v16 }
 0x6e8   : > { %2077 = vmatprep.subr.bf16.mxu1 %v2248_v8 }
 0x6eb   : > { %2078 = vmatpush3.bf16.msra.mxu1 %v2153_v17 }
 0x6ec   : > { %2079 = vmatprep.subr.bf16.mxu1 %v2248_v8 }
 0x6ef   : > { %2080 = vmatpush3.bf16.msra.mxu1 %v2154_v18 }
 0x6f0   : > { %2081 = vmatprep.subr.bf16.mxu1 %v2248_v8 }
 0x6f3   : > { %2082 = vmatpush3.bf16.msra.mxu1 %v2155_v19 }
 0x6f4   : > { %2083 = vmatprep.subr.bf16.mxu1 %v2248_v8 }
 0x6f7   : > { %2084 = vmatpush3.bf16.msra.mxu1 %v2156_v20 }
 0x6f8   : > { %2085 = vmatprep.subr.bf16.mxu1 %v2248_v8 }
 0x6fb   : > { %2086 = vmatpush3.bf16.msra.mxu1 %v2157_v21 }
 0x6fc   : > { %2087 = vmatprep.subr.bf16.mxu1 %v2248_v8 }
 0x6ff   : > { %2088 = vmatpush3.bf16.msra.mxu1 %v2158_v23 }
 0x700   : > { %2089 = vmatprep.subr.bf16.mxu1 %v2248_v8 }
 0x703   : > { %2090 = vmatpush3.bf16.msra.mxu1 %v2159_v24 }
 0x7b9   : > { %v1622_v57 = vpop.f32.mrb[12].mxu1 }
 0x7ba   : > { %v1623_v58 = vadd.f32 %v1946_v56, %v1622_v57  ;;  %v2065_v59 = vpop.f32.mrb[13].mxu1 }
 0x7bb   : > { %v1625_v60 = vpop.f32.mrb[14].mxu1 }
 0x7bc   : > { %v2591_v50 = vadd.f32 %v1623_v58, %v2384_v0  ;;  %v2066_v61 = vpop.f32.mrb[15].mxu1  ;;  %v2151_v0 = vld [vmem:[%s2706_s9 + $0x8] sm:$0xff]  }
 0x7bd   : > { %2070 = vmatpush3.bf16.msra.mxu0 %v2151_v0 }
 0x7be   : > { %v1631_v62 = vsel %vm440_vm0, %v2591_v50, 0.0 }
 0x7bf   : > { %1632 = vadd.xlane.f32.xlu1 %v1631_v62 }
 0x84c   : > { %v1633_v63 = vpop.xlane.xlu1 %1632 }
 0x84d   : > { %v1634_v52 = vmul.f32 0.03125, %v1633_v63 }
 0x84f   : > { %v1635_v1 = vsub.f32 %v2591_v50, %v1634_v52 }
 0x851   : > { %v1636_v2 = vmul.f32 %v1635_v1, %v1635_v1 }
 0x853   : > { %v1637_v3 = vsel %vm440_vm0, %v1636_v2, 0.0 }
 0x854   : > { %1638 = vadd.xlane.f32.xlu0 %v1637_v3 }
 0x8e1   : > { %v1639_v5 = vpop.xlane.xlu0 %1638 }
 0x8e2   : > { %v1640_v6 = vmul.f32 0.03125, %v1639_v5 }
 0x8e4   : > { %v1641_v7 = vadd.f32 1e-05, %v1640_v6 }
 0x8e6   : > { %2178 = vrsqrt.f32 %v1641_v7 }
 0x8f0   : > { %v2179_v9 = vpop.eup %2178 }
 0x8f1   : > { %v1643_v11 = vmul.f32 %v2179_v9, %v1635_v1 }
 0x8f3   : > { %v1650_v13 = vmul.f32 %v1950_v10, %v1643_v11 }
 0x8f5   : > { %v1657_v14 = vadd.f32 %v1951_v12, %v1650_v13 }
 0x8f7   : > { %v1658_v15 = vpack.c.bf16 %v1657_v14, %v1657_v14 }
 0x8f9   : > { %2072 = vmatmul.mubr.msk.bf16.vlgmr.msra.gmra.mrb[24].mxu0 %vm440_vm0, %v1658_v15 }
 0x9cc   : > { %v1719_v29 = vpop.f32.mrb[24].mxu0 }
 0x9cd   : > { %v1720_v30 = vadd.f32 %v1952_v25, %v1719_v29  ;;  %v2073_v31 = vpop.f32.mrb[25].mxu0 }
 0x9ce   : > { %v1722_v32 = vpop.f32.mrb[26].mxu0 }
 0x9cf   : > { %v1725_v33 = vmul.f32 -1.702, %v1720_v30  ;;  %v2074_v34 = vpop.f32.mrb[27].mxu0 }
 0x9d1   : > { %v1726_v35 = vmul.f32 1.442695, %v1725_v33 }
 0x9d3   : > { %2180 = vpow2.f32 %v1726_v35 }
 0x9dd   : > { %v2181_v8 = vpop.eup %2180 }
 0x9de   : > { %v1728_v36 = vadd.f32 1.0, %v2181_v8 }
 0x9e0   : > { %2182 = vrcp.f32 %v1728_v36 }
 0x9ea   : > { %v2183_v37 = vpop.eup %2182 }
 0x9eb   : > { %v1730_v38 = vmul.f32 %v2183_v37, %v1720_v30 }
 0x9ed   : > { %v1731_v41 = vpack.c.bf16 %v1730_v38, %v1730_v38 }
 0x9ef   : > { %2092 = vmatmul.mubr.bf16.vlgmr.msra.gmra.mrb[16].mxu1 %v1731_v41 }
 0xac2   : > { %v1837_v22 = vpop.f32.mrb[16].mxu1 }
 0xac3   : > { %v1838_v44 = vadd.f32 %v1956_v43, %v1837_v22  ;;  %v2093_v45 = vpop.f32.mrb[17].mxu1 }
 0xac4   : > { %v1840_v46 = vpop.f32.mrb[18].mxu1 }
 0xac5   : > { %v1843_v47 = vadd.f32 %v1838_v44, %v2591_v50  ;;  %v2094_v48 = vpop.f32.mrb[19].mxu1 }
 0xac7   : > { %1844 = vst.msk [vmem:[%s431_s24] sm:$0xff] %vm440_vm0, %v1843_v47 }
 0xac8   : > { %2197 = shalt.err (!%p2194_p3)
}
 0xac9   : > { %s2198_s0 = scalar_lea.hbm %s2654_s1, 128  ;;  %s2202_s24 = scalar_lea.hbm %s2710_s13, 256 }
 0xaca   : > { %p2199_p4 = scmp.ne.s32.totalorder %s2654_s1, %s2198_s0  ;;  %p2203_p9 = scmp.lt.u32.totalorder %s2654_s1, %s2710_s13 }
 0xacb   : > { %p2204_p10 = scmp.lt.u32.totalorder %s2202_s24, %s2198_s0  ;;  %p2206_p12 = scmp.lt.u32.totalorder %s2198_s0, %s2654_s1 }
 0xacc   : > { %p2200_p7 = pnand %p2199_p4, %p2369_p5 }
 0xacd   : > { %p2205_p11 = por %p2204_p10, %p2203_p9 }
 0xace   : > { %p2201_p8 = pneg %p2200_p7 }
 0xacf   : > { %p2207_p13 = por %p2206_p12, %p2205_p11 }
 0xad1   : > { %p2208_p0 = pnand %p2207_p13, %p2201_p8 }
 0xad3   : > { %2211 = shalt.err (!%p2208_p0)
}
 0xad4   : > { %2095 = dma.vmem_to_hbm [thread:$0]  (%p2369_p5), %s2656_s30, 128, %s2654_s1, %s1846_s29  }
 0xad5 PF: > { %p2101_p1 = scmp.ge.s32.totalorder %s2246_s28, 2  ;;  %s1871_s2 = sand.u32 1, %s2234_s25  }
 0xad6   : > { %s1872_s20 = scalar_lea.sflag [#allocation3], %s1871_s2 }
 0xad7   : > { %p2098_p2 = pnand %p2101_p1, %p2373_p6 }
 0xad9   : > { %2229 = dma.done.wait (!%p2098_p2), %s1872_s20, 128  }
 0xada   : > { %2231 = vsyncadd (!%p2098_p2), %s1872_s20, 4294967168  ;;  %p23_p3 = scmp.ge.s32.totalorder %s2356_s14, 4   ;;  %s2719_s25 = smov %s2238_s26 }
 0xadb   : > { %s2720_s26 = smov %s2242_s27  ;;  %s2721_s27 = smov %s2367_s17 }
 0xadc   : > { %s2722_s28 = smov %s2356_s14  ;;  %25 = sbr.rel (!%p23_p3) target bundleno = 7 (0x7), region = 107 }
 0xae3   :  { %1877 = vsyncpa [#allocation3], 1 }
 0xae4   :  { %1879 = vsyncpa [#allocation3 + $0x1], 1 }

</bundles_post_ra>
